<compile_context>
chip_gen: v7x
topology: tpu7x:2x2x1
jax: 0.10.0
libtpu: 0.0.40
codegen_flags: <defaults>
</compile_context>

<pallas_src>
import functools

import jax
import jax.numpy as jnp
import numpy as np
from jax import lax
from jax.experimental import pallas as pl
from jax.experimental.pallas import tpu as pltpu


def attention_kernel(x_ref, wq_ref, wk_ref, wv_ref, wo_ref, b_ref, o_ref, acc_ref,
                     *, heads, block_b, seq):
    # x_ref:   (block_b, seq, dim)
    # wq/wk/wv_ref: (heads, dim, dim_head)   (softmax scale pre-folded into wq)
    # wo_ref:  (heads, dim_head, dim_pad)    (output projection, zero-padded lanes)
    # b_ref:   (1, dim_pad)                  (output bias, zero-padded lanes)
    # o_ref:   (block_b, seq, dim_pad)
    # acc_ref: VMEM scratch (block_b*seq, dim_pad) f32
    f32 = jnp.float32
    dim = x_ref.shape[-1]
    bbn = block_b * seq

    # (block_b, seq, dim) -> (block_b*seq, dim): leading-dim merge only (trivial).
    x = x_ref[...].reshape(bbn, dim)

    # Initialize the fused-projection accumulator with the (padded) output bias.
    acc_ref[...] = jnp.broadcast_to(b_ref[...], acc_ref.shape)

    def head_body(h, carry):
        # Per-head projections: lane-dense (bbn, dim_head) tiles, M = block_b*seq.
        qh = jnp.dot(x, wq_ref[h], preferred_element_type=f32)
        kh = jnp.dot(x, wk_ref[h], preferred_element_type=f32)
        vh = jnp.dot(x, wv_ref[h], preferred_element_type=f32)

        outs = []
        for bi in range(block_b):            # static loop: attention is per batch element
            rows = slice(bi * seq, (bi + 1) * seq)   # sublane-aligned (multiples of seq)
            qb, kb, vb = qh[rows], kh[rows], vh[rows]
            # q @ k^T without an explicit transpose (contract the last dim of both).
            s = lax.dot_general(qb, kb, (((1,), (1,)), ((), ())),
                                preferred_element_type=f32)        # (seq, seq)
            m = jnp.max(s, axis=-1, keepdims=True)
            p = jnp.exp(s - m)
            l = jnp.sum(p, axis=-1, keepdims=True)
            ob = jnp.dot(p, vb, preferred_element_type=f32)        # (seq, dim_head)
            # Deferred softmax normalization on the small (seq, dim_head) output.
            # (approx=True would offload to the EUP at ~1e-3 relative deviation.)
            outs.append(ob * pl.reciprocal(l, approx=False))
        oh = outs[0] if block_b == 1 else jnp.concatenate(outs, axis=0)  # (bbn, dim_head)

        # Fused concat + output projection: accumulate this head's contribution.
        acc_ref[...] += jnp.dot(oh, wo_ref[h], preferred_element_type=f32)
        return carry

    lax.fori_loop(0, heads, head_body, 0, unroll=True)

    # Lane-dense (dim_pad = multiple of 128) unmasked store.
    o_ref[...] = acc_ref[...].reshape(o_ref.shape).astype(o_ref.dtype)


def attention_pallas(x, w_qkv, w_out, b_out, *, heads, dim_head, block_b=1):
    b, n, dim = x.shape
    inner = heads * dim_head
    assert w_qkv.shape == (dim, 3 * inner)
    assert w_out.shape == (inner, dim)
    assert b % block_b == 0, "block_b must divide the batch"
    scale = dim_head ** -0.5
    dim_pad = ((dim + 127) // 128) * 128   # lane-dense output width

    # ---- wrapper-side layout plumbing (XLA ops, outside the kernel) ----
    def to_heads(w):                        # (dim, inner) -> (heads, dim, dim_head)
        return w.reshape(dim, heads, dim_head).transpose(1, 0, 2)

    w_q = to_heads(w_qkv[:, 0 * inner:1 * inner]) * scale   # fold softmax scale into q
    w_k = to_heads(w_qkv[:, 1 * inner:2 * inner])
    w_v = to_heads(w_qkv[:, 2 * inner:3 * inner])
    # (inner, dim) -> (heads, dim_head, dim_pad): per-head slabs, zero-padded lanes.
    w_o = jnp.pad(w_out.reshape(heads, dim_head, dim),
                  ((0, 0), (0, 0), (0, dim_pad - dim)))
    b_o = jnp.pad(b_out.reshape(1, dim), ((0, 0), (0, dim_pad - dim)))
    # NOTE: for bf16 models, cast x / w_q / w_k / w_v / w_o to bf16 here (keep
    # preferred_element_type=f32 and f32 softmax math inside the kernel).

    kernel = functools.partial(attention_kernel, heads=heads, block_b=block_b, seq=n)
    out = pl.pallas_call(
        kernel,
        out_shape=jax.ShapeDtypeStruct((b, n, dim_pad), x.dtype),
        grid=(b // block_b,),
        in_specs=[
            pl.BlockSpec((block_b, n, dim), lambda i: (i, 0, 0)),
            pl.BlockSpec((heads, dim, dim_head), lambda i: (0, 0, 0)),
            pl.BlockSpec((heads, dim, dim_head), lambda i: (0, 0, 0)),
            pl.BlockSpec((heads, dim, dim_head), lambda i: (0, 0, 0)),
            pl.BlockSpec((heads, dim_head, dim_pad), lambda i: (0, 0, 0)),
            pl.BlockSpec((1, dim_pad), lambda i: (0, 0)),
        ],
        out_specs=pl.BlockSpec((block_b, n, dim_pad), lambda i: (i, 0, 0)),
        scratch_shapes=[pltpu.VMEM((block_b * n, dim_pad), jnp.float32)],
        compiler_params=pltpu.CompilerParams(
            dimension_semantics=("parallel",)),
    )(x, w_q, w_k, w_v, w_o, b_o)
    return out[:, :, :dim]   # drop the lane padding


def attention_reference(x, w_qkv, w_out, b_out, *, heads, dim_head):
    """Pure-JAX reference matching the PyTorch forward."""
    b, n, dim = x.shape
    inner = heads * dim_head
    scale = dim_head ** -0.5
    qkv = x @ w_qkv                                      # (b, n, 3*inner)
    q, k, v = jnp.split(qkv, 3, axis=-1)

    def split_heads(t):                                  # b n (h d) -> b h n d
        return t.reshape(b, n, heads, dim_head).transpose(0, 2, 1, 3)

    q, k, v = map(split_heads, (q, k, v))
    dots = jnp.einsum('bhnd,bhmd->bhnm', q, k) * scale
    attn = jax.nn.softmax(dots, axis=-1)
    out = jnp.einsum('bhnm,bhmd->bhnd', attn, v)
    out = out.transpose(0, 2, 1, 3).reshape(b, n, inner)  # b h n d -> b n (h d)
    return out @ w_out + b_out


if __name__ == "__main__":
    # Small shapes consistent with the module: dim=32, heads=4, dim_head=16
    batch, seq, dim = 2, 8, 32
    heads, dim_head = 4, 16
    inner = heads * dim_head

    key = jax.random.PRNGKey(0)
    kx, kq, kw, kb = jax.random.split(key, 4)

    x = jax.random.normal(kx, (batch, seq, dim), dtype=jnp.float32)

    # Deterministic parameter init (uniform, Linear-style bounds).
    # Stored already transposed for x @ W (PyTorch Linear computes x @ W.T).
    bound_qkv = 1.0 / np.sqrt(dim)
    w_qkv = jax.random.uniform(kq, (dim, 3 * inner), dtype=jnp.float32,
                               minval=-bound_qkv, maxval=bound_qkv)
    bound_out = 1.0 / np.sqrt(inner)
    w_out = jax.random.uniform(kw, (inner, dim), dtype=jnp.float32,
                               minval=-bound_out, maxval=bound_out)
    b_out = jax.random.uniform(kb, (1, dim), dtype=jnp.float32,
                               minval=-bound_out, maxval=bound_out)

    y = attention_pallas(x, w_qkv, w_out, b_out,
                         heads=heads, dim_head=dim_head, block_b=1)
    y = jax.block_until_ready(y)

    y_ref = attention_reference(x, w_qkv, w_out, b_out,
                                heads=heads, dim_head=dim_head)
    np.testing.assert_allclose(np.asarray(y), np.asarray(y_ref),
                               rtol=1e-4, atol=1e-5)
    print("KERNEL_OK")
</pallas_src>

<mosaic_0001>
module attributes {stable_mosaic.version = 11 : i64} {
  func.func @attention_kernel(%arg0: i32, %arg1: memref<1x8x32xf32, #tpu.memory_space<vmem>>, %arg2: memref<4x32x16xf32, #tpu.memory_space<vmem>>, %arg3: memref<4x32x16xf32, #tpu.memory_space<vmem>>, %arg4: memref<4x32x16xf32, #tpu.memory_space<vmem>>, %arg5: memref<4x16x128xf32, #tpu.memory_space<vmem>>, %arg6: memref<1x128xf32, #tpu.memory_space<vmem>>, %arg7: memref<1x8x128xf32, #tpu.memory_space<vmem>>, %arg8: memref<8x128xf32, #tpu.memory_space<vmem>>) attributes {dimension_semantics = [#tpu.dimension_semantics<parallel>], iteration_bounds = array<i64: 2>, scalar_prefetch = 0 : i64, scratch_operands = 1 : i64, tpu.core_type = #tpu.core_type<tc>, window_params = [{transform_indices = @transform_0, window_bounds = array<i64: 1, 8, 32>}, {pipeline_mode = #tpu.pipeline_mode<synchronous>, transform_indices = @transform_1, window_bounds = array<i64: 4, 32, 16>}, {pipeline_mode = #tpu.pipeline_mode<synchronous>, transform_indices = @transform_2, window_bounds = array<i64: 4, 32, 16>}, {pipeline_mode = #tpu.pipeline_mode<synchronous>, transform_indices = @transform_3, window_bounds = array<i64: 4, 32, 16>}, {pipeline_mode = #tpu.pipeline_mode<synchronous>, transform_indices = @transform_4, window_bounds = array<i64: 4, 16, 128>}, {pipeline_mode = #tpu.pipeline_mode<synchronous>, transform_indices = @transform_5, window_bounds = array<i64: 1, 128>}, {transform_indices = @transform_6, window_bounds = array<i64: 1, 8, 128>}]} {
    %c0 = arith.constant 0 : index
    %c0_0 = arith.constant 0 : index
    %c0_1 = arith.constant 0 : index
    %0 = vector.load %arg1[%c0, %c0_0, %c0_1] : memref<1x8x32xf32, #tpu.memory_space<vmem>>, vector<1x8x32xf32>
    %1 = vector.shape_cast %0 : vector<1x8x32xf32> to vector<8x32xf32>
    %c0_2 = arith.constant 0 : index
    %c0_3 = arith.constant 0 : index
    %2 = vector.load %arg6[%c0_2, %c0_3] : memref<1x128xf32, #tpu.memory_space<vmem>>, vector<1x128xf32>
    %3 = vector.shape_cast %2 : vector<1x128xf32> to vector<1x128xf32>
    %4 = vector.broadcast %3 : vector<1x128xf32> to vector<8x128xf32>
    %c0_4 = arith.constant 0 : index
    %c0_5 = arith.constant 0 : index
    %5 = vector.load %arg8[%c0_4, %c0_5] : memref<8x128xf32, #tpu.memory_space<vmem>>, vector<8x128xf32>
    tpu.vector_store %arg8[%c0_4, %c0_5], %4 {strides = array<i32>} : memref<8x128xf32, #tpu.memory_space<vmem>>, vector<8x128xf32>,
    %c0_i32 = arith.constant 0 : i32
    %6 = arith.index_cast %c0_i32 : i32 to index
    %c0_6 = arith.constant 0 : index
    %c0_7 = arith.constant 0 : index
    %7 = vector.load %arg2[%6, %c0_6, %c0_7] : memref<4x32x16xf32, #tpu.memory_space<vmem>>, vector<1x32x16xf32>
    %8 = vector.shape_cast %7 : vector<1x32x16xf32> to vector<32x16xf32>
    %cst = arith.constant dense<0.000000e+00> : vector<8x16xf32>
    %9 = tpu.matmul %1, %8, %cst {dimension_numbers = #tpu.dot_dimension_numbers<[1], [0], [0], [1], [0, 0, 1, 1], [], []>} : vector<8x32xf32>, vector<32x16xf32>, vector<8x16xf32> -> vector<8x16xf32>
    %10 = arith.index_cast %c0_i32 : i32 to index
    %c0_8 = arith.constant 0 : index
    %c0_9 = arith.constant 0 : index
    %11 = vector.load %arg3[%10, %c0_8, %c0_9] : memref<4x32x16xf32, #tpu.memory_space<vmem>>, vector<1x32x16xf32>
    %12 = vector.shape_cast %11 : vector<1x32x16xf32> to vector<32x16xf32>
    %cst_10 = arith.constant dense<0.000000e+00> : vector<8x16xf32>
    %13 = tpu.matmul %1, %12, %cst_10 {dimension_numbers = #tpu.dot_dimension_numbers<[1], [0], [0], [1], [0, 0, 1, 1], [], []>} : vector<8x32xf32>, vector<32x16xf32>, vector<8x16xf32> -> vector<8x16xf32>
    %14 = arith.index_cast %c0_i32 : i32 to index
    %c0_11 = arith.constant 0 : index
    %c0_12 = arith.constant 0 : index
    %15 = vector.load %arg4[%14, %c0_11, %c0_12] : memref<4x32x16xf32, #tpu.memory_space<vmem>>, vector<1x32x16xf32>
    %16 = vector.shape_cast %15 : vector<1x32x16xf32> to vector<32x16xf32>
    %cst_13 = arith.constant dense<0.000000e+00> : vector<8x16xf32>
    %17 = tpu.matmul %1, %16, %cst_13 {dimension_numbers = #tpu.dot_dimension_numbers<[1], [0], [0], [1], [0, 0, 1, 1], [], []>} : vector<8x32xf32>, vector<32x16xf32>, vector<8x16xf32> -> vector<8x16xf32>
    %cst_14 = arith.constant dense<0.000000e+00> : vector<8x8xf32>
    %18 = tpu.matmul %9, %13, %cst_14 {dimension_numbers = #tpu.dot_dimension_numbers<[1], [1], [0], [0], [0, 0, 1, 0], [], []>} : vector<8x16xf32>, vector<8x16xf32>, vector<8x8xf32> -> vector<8x8xf32>
    %cst_15 = arith.constant dense<0xFF800000> : vector<8xf32>
    %19 = vector.multi_reduction <maximumf>, %18, %cst_15 [1] : vector<8x8xf32> to vector<8xf32>
    %20 = vector.shape_cast %19 : vector<8xf32> to vector<8x1xf32>
    %21 = vector.broadcast %20 : vector<8x1xf32> to vector<8x8xf32>
    %22 = arith.subf %18, %21 : vector<8x8xf32>
    %23 = math.exp %22 : vector<8x8xf32>
    %cst_16 = arith.constant dense<0.000000e+00> : vector<8xf32>
    %24 = vector.multi_reduction <add>, %23, %cst_16 [1] : vector<8x8xf32> to vector<8xf32>
    %25 = vector.shape_cast %24 : vector<8xf32> to vector<8x1xf32>
    %cst_17 = arith.constant dense<0.000000e+00> : vector<8x16xf32>
    %26 = tpu.matmul %23, %17, %cst_17 {dimension_numbers = #tpu.dot_dimension_numbers<[1], [0], [0], [1], [0, 0, 1, 1], [], []>} : vector<8x8xf32>, vector<8x16xf32>, vector<8x16xf32> -> vector<8x16xf32>
    %27 = tpu.reciprocal %25 : vector<8x1xf32> -> vector<8x1xf32>
    %28 = vector.broadcast %27 : vector<8x1xf32> to vector<8x16xf32>
    %29 = arith.mulf %26, %28 : vector<8x16xf32>
    %c0_18 = arith.constant 0 : index
    %c0_19 = arith.constant 0 : index
    %30 = vector.load %arg8[%c0_18, %c0_19] : memref<8x128xf32, #tpu.memory_space<vmem>>, vector<8x128xf32>
    %31 = arith.index_cast %c0_i32 : i32 to index
    %c0_20 = arith.constant 0 : index
    %c0_21 = arith.constant 0 : index
    %32 = vector.load %arg5[%31, %c0_20, %c0_21] : memref<4x16x128xf32, #tpu.memory_space<vmem>>, vector<1x16x128xf32>
    %33 = vector.shape_cast %32 : vector<1x16x128xf32> to vector<16x128xf32>
    %cst_22 = arith.constant dense<0.000000e+00> : vector<8x128xf32>
    %34 = tpu.matmul %29, %33, %cst_22 {dimension_numbers = #tpu.dot_dimension_numbers<[1], [0], [0], [1], [0, 0, 1, 1], [], []>} : vector<8x16xf32>, vector<16x128xf32>, vector<8x128xf32> -> vector<8x128xf32>
    %35 = arith.addf %30, %34 : vector<8x128xf32>
    %c0_23 = arith.constant 0 : index
    %c0_24 = arith.constant 0 : index
    %36 = vector.load %arg8[%c0_23, %c0_24] : memref<8x128xf32, #tpu.memory_space<vmem>>, vector<8x128xf32>
    tpu.vector_store %arg8[%c0_23, %c0_24], %35 {strides = array<i32>} : memref<8x128xf32, #tpu.memory_space<vmem>>, vector<8x128xf32>,
    %c1_i32 = arith.constant 1 : i32
    %37 = arith.index_cast %c1_i32 : i32 to index
    %c0_25 = arith.constant 0 : index
    %c0_26 = arith.constant 0 : index
    %38 = vector.load %arg2[%37, %c0_25, %c0_26] : memref<4x32x16xf32, #tpu.memory_space<vmem>>, vector<1x32x16xf32>
    %39 = vector.shape_cast %38 : vector<1x32x16xf32> to vector<32x16xf32>
    %cst_27 = arith.constant dense<0.000000e+00> : vector<8x16xf32>
    %40 = tpu.matmul %1, %39, %cst_27 {dimension_numbers = #tpu.dot_dimension_numbers<[1], [0], [0], [1], [0, 0, 1, 1], [], []>} : vector<8x32xf32>, vector<32x16xf32>, vector<8x16xf32> -> vector<8x16xf32>
    %41 = arith.index_cast %c1_i32 : i32 to index
    %c0_28 = arith.constant 0 : index
    %c0_29 = arith.constant 0 : index
    %42 = vector.load %arg3[%41, %c0_28, %c0_29] : memref<4x32x16xf32, #tpu.memory_space<vmem>>, vector<1x32x16xf32>
    %43 = vector.shape_cast %42 : vector<1x32x16xf32> to vector<32x16xf32>
    %cst_30 = arith.constant dense<0.000000e+00> : vector<8x16xf32>
    %44 = tpu.matmul %1, %43, %cst_30 {dimension_numbers = #tpu.dot_dimension_numbers<[1], [0], [0], [1], [0, 0, 1, 1], [], []>} : vector<8x32xf32>, vector<32x16xf32>, vector<8x16xf32> -> vector<8x16xf32>
    %45 = arith.index_cast %c1_i32 : i32 to index
    %c0_31 = arith.constant 0 : index
    %c0_32 = arith.constant 0 : index
    %46 = vector.load %arg4[%45, %c0_31, %c0_32] : memref<4x32x16xf32, #tpu.memory_space<vmem>>, vector<1x32x16xf32>
    %47 = vector.shape_cast %46 : vector<1x32x16xf32> to vector<32x16xf32>
    %cst_33 = arith.constant dense<0.000000e+00> : vector<8x16xf32>
    %48 = tpu.matmul %1, %47, %cst_33 {dimension_numbers = #tpu.dot_dimension_numbers<[1], [0], [0], [1], [0, 0, 1, 1], [], []>} : vector<8x32xf32>, vector<32x16xf32>, vector<8x16xf32> -> vector<8x16xf32>
    %cst_34 = arith.constant dense<0.000000e+00> : vector<8x8xf32>
    %49 = tpu.matmul %40, %44, %cst_34 {dimension_numbers = #tpu.dot_dimension_numbers<[1], [1], [0], [0], [0, 0, 1, 0], [], []>} : vector<8x16xf32>, vector<8x16xf32>, vector<8x8xf32> -> vector<8x8xf32>
    %cst_35 = arith.constant dense<0xFF800000> : vector<8xf32>
    %50 = vector.multi_reduction <maximumf>, %49, %cst_35 [1] : vector<8x8xf32> to vector<8xf32>
    %51 = vector.shape_cast %50 : vector<8xf32> to vector<8x1xf32>
    %52 = vector.broadcast %51 : vector<8x1xf32> to vector<8x8xf32>
    %53 = arith.subf %49, %52 : vector<8x8xf32>
    %54 = math.exp %53 : vector<8x8xf32>
    %cst_36 = arith.constant dense<0.000000e+00> : vector<8xf32>
    %55 = vector.multi_reduction <add>, %54, %cst_36 [1] : vector<8x8xf32> to vector<8xf32>
    %56 = vector.shape_cast %55 : vector<8xf32> to vector<8x1xf32>
    %cst_37 = arith.constant dense<0.000000e+00> : vector<8x16xf32>
    %57 = tpu.matmul %54, %48, %cst_37 {dimension_numbers = #tpu.dot_dimension_numbers<[1], [0], [0], [1], [0, 0, 1, 1], [], []>} : vector<8x8xf32>, vector<8x16xf32>, vector<8x16xf32> -> vector<8x16xf32>
    %58 = tpu.reciprocal %56 : vector<8x1xf32> -> vector<8x1xf32>
    %59 = vector.broadcast %58 : vector<8x1xf32> to vector<8x16xf32>
    %60 = arith.mulf %57, %59 : vector<8x16xf32>
    %c0_38 = arith.constant 0 : index
    %c0_39 = arith.constant 0 : index
    %61 = vector.load %arg8[%c0_38, %c0_39] : memref<8x128xf32, #tpu.memory_space<vmem>>, vector<8x128xf32>
    %62 = arith.index_cast %c1_i32 : i32 to index
    %c0_40 = arith.constant 0 : index
    %c0_41 = arith.constant 0 : index
    %63 = vector.load %arg5[%62, %c0_40, %c0_41] : memref<4x16x128xf32, #tpu.memory_space<vmem>>, vector<1x16x128xf32>
    %64 = vector.shape_cast %63 : vector<1x16x128xf32> to vector<16x128xf32>
    %cst_42 = arith.constant dense<0.000000e+00> : vector<8x128xf32>
    %65 = tpu.matmul %60, %64, %cst_42 {dimension_numbers = #tpu.dot_dimension_numbers<[1], [0], [0], [1], [0, 0, 1, 1], [], []>} : vector<8x16xf32>, vector<16x128xf32>, vector<8x128xf32> -> vector<8x128xf32>
    %66 = arith.addf %61, %65 : vector<8x128xf32>
    %c0_43 = arith.constant 0 : index
    %c0_44 = arith.constant 0 : index
    %67 = vector.load %arg8[%c0_43, %c0_44] : memref<8x128xf32, #tpu.memory_space<vmem>>, vector<8x128xf32>
    tpu.vector_store %arg8[%c0_43, %c0_44], %66 {strides = array<i32>} : memref<8x128xf32, #tpu.memory_space<vmem>>, vector<8x128xf32>,
    %c2_i32 = arith.constant 2 : i32
    %68 = arith.index_cast %c2_i32 : i32 to index
    %c0_45 = arith.constant 0 : index
    %c0_46 = arith.constant 0 : index
    %69 = vector.load %arg2[%68, %c0_45, %c0_46] : memref<4x32x16xf32, #tpu.memory_space<vmem>>, vector<1x32x16xf32>
    %70 = vector.shape_cast %69 : vector<1x32x16xf32> to vector<32x16xf32>
    %cst_47 = arith.constant dense<0.000000e+00> : vector<8x16xf32>
    %71 = tpu.matmul %1, %70, %cst_47 {dimension_numbers = #tpu.dot_dimension_numbers<[1], [0], [0], [1], [0, 0, 1, 1], [], []>} : vector<8x32xf32>, vector<32x16xf32>, vector<8x16xf32> -> vector<8x16xf32>
    %72 = arith.index_cast %c2_i32 : i32 to index
    %c0_48 = arith.constant 0 : index
    %c0_49 = arith.constant 0 : index
    %73 = vector.load %arg3[%72, %c0_48, %c0_49] : memref<4x32x16xf32, #tpu.memory_space<vmem>>, vector<1x32x16xf32>
    %74 = vector.shape_cast %73 : vector<1x32x16xf32> to vector<32x16xf32>
    %cst_50 = arith.constant dense<0.000000e+00> : vector<8x16xf32>
    %75 = tpu.matmul %1, %74, %cst_50 {dimension_numbers = #tpu.dot_dimension_numbers<[1], [0], [0], [1], [0, 0, 1, 1], [], []>} : vector<8x32xf32>, vector<32x16xf32>, vector<8x16xf32> -> vector<8x16xf32>
    %76 = arith.index_cast %c2_i32 : i32 to index
    %c0_51 = arith.constant 0 : index
    %c0_52 = arith.constant 0 : index
    %77 = vector.load %arg4[%76, %c0_51, %c0_52] : memref<4x32x16xf32, #tpu.memory_space<vmem>>, vector<1x32x16xf32>
    %78 = vector.shape_cast %77 : vector<1x32x16xf32> to vector<32x16xf32>
    %cst_53 = arith.constant dense<0.000000e+00> : vector<8x16xf32>
    %79 = tpu.matmul %1, %78, %cst_53 {dimension_numbers = #tpu.dot_dimension_numbers<[1], [0], [0], [1], [0, 0, 1, 1], [], []>} : vector<8x32xf32>, vector<32x16xf32>, vector<8x16xf32> -> vector<8x16xf32>
    %cst_54 = arith.constant dense<0.000000e+00> : vector<8x8xf32>
    %80 = tpu.matmul %71, %75, %cst_54 {dimension_numbers = #tpu.dot_dimension_numbers<[1], [1], [0], [0], [0, 0, 1, 0], [], []>} : vector<8x16xf32>, vector<8x16xf32>, vector<8x8xf32> -> vector<8x8xf32>
    %cst_55 = arith.constant dense<0xFF800000> : vector<8xf32>
    %81 = vector.multi_reduction <maximumf>, %80, %cst_55 [1] : vector<8x8xf32> to vector<8xf32>
    %82 = vector.shape_cast %81 : vector<8xf32> to vector<8x1xf32>
    %83 = vector.broadcast %82 : vector<8x1xf32> to vector<8x8xf32>
    %84 = arith.subf %80, %83 : vector<8x8xf32>
    %85 = math.exp %84 : vector<8x8xf32>
    %cst_56 = arith.constant dense<0.000000e+00> : vector<8xf32>
    %86 = vector.multi_reduction <add>, %85, %cst_56 [1] : vector<8x8xf32> to vector<8xf32>
    %87 = vector.shape_cast %86 : vector<8xf32> to vector<8x1xf32>
    %cst_57 = arith.constant dense<0.000000e+00> : vector<8x16xf32>
    %88 = tpu.matmul %85, %79, %cst_57 {dimension_numbers = #tpu.dot_dimension_numbers<[1], [0], [0], [1], [0, 0, 1, 1], [], []>} : vector<8x8xf32>, vector<8x16xf32>, vector<8x16xf32> -> vector<8x16xf32>
    %89 = tpu.reciprocal %87 : vector<8x1xf32> -> vector<8x1xf32>
    %90 = vector.broadcast %89 : vector<8x1xf32> to vector<8x16xf32>
    %91 = arith.mulf %88, %90 : vector<8x16xf32>
    %c0_58 = arith.constant 0 : index
    %c0_59 = arith.constant 0 : index
    %92 = vector.load %arg8[%c0_58, %c0_59] : memref<8x128xf32, #tpu.memory_space<vmem>>, vector<8x128xf32>
    %93 = arith.index_cast %c2_i32 : i32 to index
    %c0_60 = arith.constant 0 : index
    %c0_61 = arith.constant 0 : index
    %94 = vector.load %arg5[%93, %c0_60, %c0_61] : memref<4x16x128xf32, #tpu.memory_space<vmem>>, vector<1x16x128xf32>
    %95 = vector.shape_cast %94 : vector<1x16x128xf32> to vector<16x128xf32>
    %cst_62 = arith.constant dense<0.000000e+00> : vector<8x128xf32>
    %96 = tpu.matmul %91, %95, %cst_62 {dimension_numbers = #tpu.dot_dimension_numbers<[1], [0], [0], [1], [0, 0, 1, 1], [], []>} : vector<8x16xf32>, vector<16x128xf32>, vector<8x128xf32> -> vector<8x128xf32>
    %97 = arith.addf %92, %96 : vector<8x128xf32>
    %c0_63 = arith.constant 0 : index
    %c0_64 = arith.constant 0 : index
    %98 = vector.load %arg8[%c0_63, %c0_64] : memref<8x128xf32, #tpu.memory_space<vmem>>, vector<8x128xf32>
    tpu.vector_store %arg8[%c0_63, %c0_64], %97 {strides = array<i32>} : memref<8x128xf32, #tpu.memory_space<vmem>>, vector<8x128xf32>,
    %c3_i32 = arith.constant 3 : i32
    %99 = arith.index_cast %c3_i32 : i32 to index
    %c0_65 = arith.constant 0 : index
    %c0_66 = arith.constant 0 : index
    %100 = vector.load %arg2[%99, %c0_65, %c0_66] : memref<4x32x16xf32, #tpu.memory_space<vmem>>, vector<1x32x16xf32>
    %101 = vector.shape_cast %100 : vector<1x32x16xf32> to vector<32x16xf32>
    %cst_67 = arith.constant dense<0.000000e+00> : vector<8x16xf32>
    %102 = tpu.matmul %1, %101, %cst_67 {dimension_numbers = #tpu.dot_dimension_numbers<[1], [0], [0], [1], [0, 0, 1, 1], [], []>} : vector<8x32xf32>, vector<32x16xf32>, vector<8x16xf32> -> vector<8x16xf32>
    %103 = arith.index_cast %c3_i32 : i32 to index
    %c0_68 = arith.constant 0 : index
    %c0_69 = arith.constant 0 : index
    %104 = vector.load %arg3[%103, %c0_68, %c0_69] : memref<4x32x16xf32, #tpu.memory_space<vmem>>, vector<1x32x16xf32>
    %105 = vector.shape_cast %104 : vector<1x32x16xf32> to vector<32x16xf32>
    %cst_70 = arith.constant dense<0.000000e+00> : vector<8x16xf32>
    %106 = tpu.matmul %1, %105, %cst_70 {dimension_numbers = #tpu.dot_dimension_numbers<[1], [0], [0], [1], [0, 0, 1, 1], [], []>} : vector<8x32xf32>, vector<32x16xf32>, vector<8x16xf32> -> vector<8x16xf32>
    %107 = arith.index_cast %c3_i32 : i32 to index
    %c0_71 = arith.constant 0 : index
    %c0_72 = arith.constant 0 : index
    %108 = vector.load %arg4[%107, %c0_71, %c0_72] : memref<4x32x16xf32, #tpu.memory_space<vmem>>, vector<1x32x16xf32>
    %109 = vector.shape_cast %108 : vector<1x32x16xf32> to vector<32x16xf32>
    %cst_73 = arith.constant dense<0.000000e+00> : vector<8x16xf32>
    %110 = tpu.matmul %1, %109, %cst_73 {dimension_numbers = #tpu.dot_dimension_numbers<[1], [0], [0], [1], [0, 0, 1, 1], [], []>} : vector<8x32xf32>, vector<32x16xf32>, vector<8x16xf32> -> vector<8x16xf32>
    %cst_74 = arith.constant dense<0.000000e+00> : vector<8x8xf32>
    %111 = tpu.matmul %102, %106, %cst_74 {dimension_numbers = #tpu.dot_dimension_numbers<[1], [1], [0], [0], [0, 0, 1, 0], [], []>} : vector<8x16xf32>, vector<8x16xf32>, vector<8x8xf32> -> vector<8x8xf32>
    %cst_75 = arith.constant dense<0xFF800000> : vector<8xf32>
    %112 = vector.multi_reduction <maximumf>, %111, %cst_75 [1] : vector<8x8xf32> to vector<8xf32>
    %113 = vector.shape_cast %112 : vector<8xf32> to vector<8x1xf32>
    %114 = vector.broadcast %113 : vector<8x1xf32> to vector<8x8xf32>
    %115 = arith.subf %111, %114 : vector<8x8xf32>
    %116 = math.exp %115 : vector<8x8xf32>
    %cst_76 = arith.constant dense<0.000000e+00> : vector<8xf32>
    %117 = vector.multi_reduction <add>, %116, %cst_76 [1] : vector<8x8xf32> to vector<8xf32>
    %118 = vector.shape_cast %117 : vector<8xf32> to vector<8x1xf32>
    %cst_77 = arith.constant dense<0.000000e+00> : vector<8x16xf32>
    %119 = tpu.matmul %116, %110, %cst_77 {dimension_numbers = #tpu.dot_dimension_numbers<[1], [0], [0], [1], [0, 0, 1, 1], [], []>} : vector<8x8xf32>, vector<8x16xf32>, vector<8x16xf32> -> vector<8x16xf32>
    %120 = tpu.reciprocal %118 : vector<8x1xf32> -> vector<8x1xf32>
    %121 = vector.broadcast %120 : vector<8x1xf32> to vector<8x16xf32>
    %122 = arith.mulf %119, %121 : vector<8x16xf32>
    %c0_78 = arith.constant 0 : index
    %c0_79 = arith.constant 0 : index
    %123 = vector.load %arg8[%c0_78, %c0_79] : memref<8x128xf32, #tpu.memory_space<vmem>>, vector<8x128xf32>
    %124 = arith.index_cast %c3_i32 : i32 to index
    %c0_80 = arith.constant 0 : index
    %c0_81 = arith.constant 0 : index
    %125 = vector.load %arg5[%124, %c0_80, %c0_81] : memref<4x16x128xf32, #tpu.memory_space<vmem>>, vector<1x16x128xf32>
    %126 = vector.shape_cast %125 : vector<1x16x128xf32> to vector<16x128xf32>
    %cst_82 = arith.constant dense<0.000000e+00> : vector<8x128xf32>
    %127 = tpu.matmul %122, %126, %cst_82 {dimension_numbers = #tpu.dot_dimension_numbers<[1], [0], [0], [1], [0, 0, 1, 1], [], []>} : vector<8x16xf32>, vector<16x128xf32>, vector<8x128xf32> -> vector<8x128xf32>
    %128 = arith.addf %123, %127 : vector<8x128xf32>
    %c0_83 = arith.constant 0 : index
    %c0_84 = arith.constant 0 : index
    %129 = vector.load %arg8[%c0_83, %c0_84] : memref<8x128xf32, #tpu.memory_space<vmem>>, vector<8x128xf32>
    tpu.vector_store %arg8[%c0_83, %c0_84], %128 {strides = array<i32>} : memref<8x128xf32, #tpu.memory_space<vmem>>, vector<8x128xf32>,
    %c4_i32 = arith.constant 4 : i32
    %c0_85 = arith.constant 0 : index
    %c0_86 = arith.constant 0 : index
    %130 = vector.load %arg8[%c0_85, %c0_86] : memref<8x128xf32, #tpu.memory_space<vmem>>, vector<8x128xf32>
    %131 = vector.shape_cast %130 : vector<8x128xf32> to vector<1x8x128xf32>
    %c0_87 = arith.constant 0 : index
    %c0_88 = arith.constant 0 : index
    %c0_89 = arith.constant 0 : index
    %132 = vector.load %arg7[%c0_87, %c0_88, %c0_89] : memref<1x8x128xf32, #tpu.memory_space<vmem>>, vector<1x8x128xf32>
    tpu.vector_store %arg7[%c0_87, %c0_88, %c0_89], %131 {strides = array<i32>} : memref<1x8x128xf32, #tpu.memory_space<vmem>>, vector<1x8x128xf32>,
    return
  }
  func.func @transform_0(%arg0: i32) -> (i32, i32, i32) {
    %c0_i32 = arith.constant 0 : i32
    %c0_i32_0 = arith.constant 0 : i32
    %c0_i32_1 = arith.constant 0 : i32
    return %arg0, %c0_i32, %c0_i32_0 : i32, i32, i32
  }
  func.func @transform_1(%arg0: i32) -> (i32, i32, i32) {
    %c0_i32 = arith.constant 0 : i32
    %c0_i32_0 = arith.constant 0 : i32
    %c0_i32_1 = arith.constant 0 : i32
    %c0_i32_2 = arith.constant 0 : i32
    return %c0_i32, %c0_i32_0, %c0_i32_1 : i32, i32, i32
  }
  func.func @transform_2(%arg0: i32) -> (i32, i32, i32) {
    %c0_i32 = arith.constant 0 : i32
    %c0_i32_0 = arith.constant 0 : i32
    %c0_i32_1 = arith.constant 0 : i32
    %c0_i32_2 = arith.constant 0 : i32
    return %c0_i32, %c0_i32_0, %c0_i32_1 : i32, i32, i32
  }
  func.func @transform_3(%arg0: i32) -> (i32, i32, i32) {
    %c0_i32 = arith.constant 0 : i32
    %c0_i32_0 = arith.constant 0 : i32
    %c0_i32_1 = arith.constant 0 : i32
    %c0_i32_2 = arith.constant 0 : i32
    return %c0_i32, %c0_i32_0, %c0_i32_1 : i32, i32, i32
  }
  func.func @transform_4(%arg0: i32) -> (i32, i32, i32) {
    %c0_i32 = arith.constant 0 : i32
    %c0_i32_0 = arith.constant 0 : i32
    %c0_i32_1 = arith.constant 0 : i32
    %c0_i32_2 = arith.constant 0 : i32
    return %c0_i32, %c0_i32_0, %c0_i32_1 : i32, i32, i32
  }
  func.func @transform_5(%arg0: i32) -> (i32, i32) {
    %c0_i32 = arith.constant 0 : i32
    %c0_i32_0 = arith.constant 0 : i32
    %c0_i32_1 = arith.constant 0 : i32
    return %c0_i32, %c0_i32_0 : i32, i32
  }
  func.func @transform_6(%arg0: i32) -> (i32, i32, i32) {
    %c0_i32 = arith.constant 0 : i32
    %c0_i32_0 = arith.constant 0 : i32
    %c0_i32_1 = arith.constant 0 : i32
    return %arg0, %c0_i32, %c0_i32_0 : i32, i32, i32
  }
}

</mosaic_0001>

<bundles_post_ra>
// kernel: tpu_custom_call.1
= control target key start
LH: loop header
LB: loop body
LE: loop exit
PB: predicated region body
PF: predicated region fallthrough
CT: control target
= control target key end

     0   :  { %11 = vsyncpa [#allocation4], 0  ;;  %s3217_s0 = inlined_call_operand.vmem [shape: f32[2,8,32], index: 0, kind: input, shape index: {}]   ;;  %s3218_s1 = inlined_call_operand.vmem [shape: f32[4,32,16], index: 1, kind: input, shape index: {}]   ;;  %s3219_s2 = inlined_call_operand.vmem [shape: f32[4,32,16], index: 2, kind: input, shape index: {}]   ;;  %s3220_s3 = inlined_call_operand.vmem [shape: f32[4,32,16], index: 3, kind: input, shape index: {}]   ;;  %s3221_s4 = inlined_call_operand.vmem [shape: f32[4,16,128], index: 4, kind: input, shape index: {}]   ;;  %s3222_s5 = inlined_call_operand.vmem [shape: f32[1,128], index: 5, kind: input, shape index: {}]   ;;  %s3223_s6 = inlined_call_operand.hbm [shape: f32[2,8,128], index: 6, kind: output, shape index: {}]  }
   0x1   :  { %13 = vsyncpa [#allocation4 + $0x1], 0  ;;  %s2809_s21 = smov 0   ;;  %s2811_s22 = smov 0  }
   0x2   :  { %s2813_s23 = smov 0   ;;  %s2815_s24 = smov 0  }
   0x3 LB: > { %s2830_s25 = sadd.s32 4294967295, %s2768_s24   ;;  %s2189_s26 = sadd.s32 4294967294, %s2768_s24   ;;  %s2768_s24 = sphi %s2815_s24, %s3229_s24   ;;  %s2764_s23 = sphi %s2813_s23, %s3228_s23   ;;  %s2760_s22 = sphi %s2811_s22, %s3227_s22   ;;  %s2756_s21 = sphi %s2809_s21, %s3226_s21  }
   0x4   : > { %s2834_s27 = sadd.s32 1, %s2768_s24   ;;  %s157_s28 = sadd.s32 1, %s2764_s23 }
   0x5   : > { %s154_s29 = ssub.s32 %s2768_s24, %s2834_s27  ;;  %p167_p0 = scmp.ne.s32.totalorder %s2764_s23, %s2760_s22 }
   0x6   : > { %p155_p1 = scmp.eq.s32.totalorder %s154_s29, 0  ;;  %p168_p2 = scmp.eq.s32.totalorder %s2830_s25, 1 }
   0x7   : > { %p173_p3 = scmp.ne.s32.totalorder %s2760_s22, %s2756_s21  ;;  %p174_p4 = scmp.eq.s32.totalorder %s2189_s26, 1 }
   0x8   : > { %s2845_s30 = scalar_select %p155_p1, %s2764_s23, %s157_s28  }
   0x9   : > { %p2847_p5 = por %p168_p2, %p167_p0  ;;  %p2851_p6 = por %p174_p4, %p173_p3 }
   0xa   : > { %p2192_p7 = scmp.ge.s32.totalorder %s2768_s24, 1  ;;  %p214_p8 = scmp.lt.s32.totalorder %s2768_s24, 3 }
   0xc   : > { %p215_p9 = pnand %p2192_p7, %p214_p8 }
   0xd   : > { %v334_v0 = vld [vmem:[%s3219_s2] sm:$0xff] (!%p215_p9)  ;;  %v335_v1 = vld [vmem:[%s3219_s2 + $0x8] sm:$0xff] (!%p215_p9)  ;;  %v2770_v3 = vmov (!%p215_p9), 0.0|0.0   ;;  %v336_v6 = vld [vmem:[%s3219_s2 + $0x10] sm:$0xff] (!%p215_p9)  ;;  %p243_p10 = scmp.lt.s32.totalorder (!%p215_p9), %s2830_s25, 1  ;;  %vm2771_vm0 = vmmov (!%p215_p9), 0  }
   0xe   : > { %218 = sbr.rel (%p215_p9) target bundleno = 3471 (0xd8f), region = 44  ;;  %v256_v2 = vld [vmem:[%s3218_s1] sm:$0xff] (!%p215_p9)  ;;  %2564 = vmatprep.subr.bf16.mxu1 (!%p215_p9), %v2770_v3  ;;  %v2565_v4 = vpack.c.bf16 (!%p215_p9), %v335_v1, %v334_v0  ;;  %2558 = vmatprep.subr.bf16.mxu0 (!%p215_p9), %v2770_v3  ;;  %v257_v5 = vld [vmem:[%s3218_s1 + $0x8] sm:$0xff] (!%p215_p9)  ;;  %v337_v7 = vld [vmem:[%s3219_s2 + $0x18] sm:$0xff] (!%p215_p9)  ;;  %v2772_v11 = vmov (!%p215_p9), 0.0   ;;  %vm260_vm1 = vcmask (!%p215_p9), 261120  }
   0xf   : > { %v2559_v8 = vpack.c.bf16 (!%p215_p9), %v257_v5, %v256_v2  ;;  %v258_v9 = vld [vmem:[%s3218_s1 + $0x10] sm:$0xff] (!%p215_p9)  ;;  %v259_v10 = vld [vmem:[%s3218_s1 + $0x18] sm:$0xff] (!%p215_p9)  ;;  %2377 = vmatprep.mubr.msk.f32.mxu1 (!%p215_p9), %vm2771_vm0, %v2772_v11  ;;  %2366 = vmatprep.mubr.msk.f32.mxu0 (!%p215_p9), %vm2771_vm0, %v2772_v11  ;;  %v2568_v12 = vpack.c.bf16 (!%p215_p9), %v337_v7, %v336_v6  ;;  %v408_v15 = vld [vmem:[%s3220_s3] sm:$0xff] (!%p215_p9)  ;;  %vm482_vm2 = vcmask (!%p215_p9), 130048   ;;  %vm559_vm3 = vcmask (!%p215_p9), 64512   ;;  %s240_s26 = sand.u32 (!%p215_p9), 1, %s2760_s22  }
  0x10   : > { %2566 = vmatpush3.bf16.msra.mxu1 (!%p215_p9), %v2565_v4  ;;  %v2562_v13 = vpack.c.bf16 (!%p215_p9), %v259_v10, %v258_v9  ;;  %v409_v16 = vld [vmem:[%s3220_s3 + $0x8] sm:$0xff] (!%p215_p9)  ;;  %v410_v17 = vld [vmem:[%s3220_s3 + $0x10] sm:$0xff] (!%p215_p9)  ;;  %v411_v19 = vld [vmem:[%s3220_s3 + $0x18] sm:$0xff] (!%p215_p9)  ;;  %s2193_s28 = sshll.u32 (!%p215_p9), %s240_s26, 3  ;;  %s2117_s16 = scalar_lea.sflag (!%p215_p9), [#allocation4], %s240_s26 }
  0x11   : > { %2560 = vmatpush3.bf16.msra.mxu0 (!%p215_p9), %v2559_v8  ;;  %2567 = vmatprep.subr.bf16.mxu1 (!%p215_p9), %v2770_v3  ;;  %v2571_v18 = vpack.c.bf16 (!%p215_p9), %v409_v16, %v408_v15  ;;  %v2574_v20 = vpack.c.bf16 (!%p215_p9), %v411_v19, %v410_v17  ;;  %v645_v35 = vld [vmem:[%s3221_s4] sm:$0xff] (!%p215_p9)  ;;  %v646_v36 = vld [vmem:[%s3221_s4 + $0x8] sm:$0xff] (!%p215_p9)  ;;  %v2210_v41 = vld [vmem:[%s3219_s2 + $0x30] sm:$0xff] (!%p215_p9)  ;;  %s2773_s17 = smov (!%p215_p9), [#allocation3]  }
  0x12   : > { %2561 = vmatprep.subr.bf16.mxu0 (!%p215_p9), %v2770_v3  ;;  %v2208_v37 = vld [vmem:[%s3219_s2 + $0x20] sm:$0xff] (!%p215_p9)  ;;  %v2577_v38 = vpack.c.bf16 (!%p215_p9), %v646_v36, %v645_v35  ;;  %v2209_v39 = vld [vmem:[%s3219_s2 + $0x28] sm:$0xff] (!%p215_p9)  ;;  %v2211_v42 = vld [vmem:[%s3219_s2 + $0x38] sm:$0xff] (!%p215_p9)  ;;  %s2710_s18 = sshll.u32 (!%p215_p9), %s2773_s17, 4  ;;  %s2711_s18 = int_to_ptr.vmem [resolvable:$false] %s2710_s18 }
  0x13   : > { %v2586_v40 = vpack.c.bf16 (!%p215_p9), %v2209_v39, %v2208_v37  ;;  %v2589_v43 = vpack.c.bf16 (!%p215_p9), %v2211_v42, %v2210_v41  ;;  %v2203_v45 = vld [vmem:[%s3218_s1 + $0x20] sm:$0xff] (!%p215_p9)  ;;  %v2204_v46 = vld [vmem:[%s3218_s1 + $0x28] sm:$0xff] (!%p215_p9)  ;;  %v2205_v52 = vld [vmem:[%s3218_s1 + $0x30] sm:$0xff] (!%p215_p9)  ;;  %s2712_s19 = scalar_lea.vmem (!%p215_p9), %s2711_s18, 256 }
  0x14   : > { %2569 = vmatpush3.bf16.msra.mxu1 (!%p215_p9), %v2568_v12  ;;  %v2580_v49 = vpack.c.bf16 (!%p215_p9), %v2204_v46, %v2203_v45  ;;  %v2206_v53 = vld [vmem:[%s3218_s1 + $0x38] sm:$0xff] (!%p215_p9)  ;;  %v2213_v57 = vld [vmem:[%s3220_s3 + $0x20] sm:$0xff] (!%p215_p9)  ;;  %v2214_v58 = vld [vmem:[%s3220_s3 + $0x28] sm:$0xff] (!%p215_p9) }
  0x15   : > { %s244_s10 = scalar_select %p243_p10, %s2830_s25, 1  ;;  %2563 = vmatpush3.bf16.msra.mxu0 %v2562_v13  ;;  %2391 = vmatprep.subr.mxu1 %v2772_v11  ;;  %v2583_v54 = vpack.c.bf16 %v2206_v53, %v2205_v52  ;;  %v2215_v59 = vld [vmem:[%s3220_s3 + $0x30] sm:$0xff]  ;;  %v2592_v60 = vpack.c.bf16 %v2214_v58, %v2213_v57  ;;  %v2216_v61 = vld [vmem:[%s3220_s3 + $0x38] sm:$0xff]  ;;  %v2224_v19 = vld [vmem:[%s3218_s1 + $0x40] sm:$0xff] }
  0x16   : > { %2570 = vmatprep.subr.bf16.mxu0 %v2770_v3  ;;  %v2595_v62 = vpack.c.bf16 %v2216_v61, %v2215_v59  ;;  %v2221_v16 = vld [vmem:[%s3221_s4 + $0x10] sm:$0xff]  ;;  %v2222_v17 = vld [vmem:[%s3221_s4 + $0x18] sm:$0xff]  ;;  %v2235_v39 = vld [vmem:[%s3220_s3 + $0x48] sm:$0xff] }
  0x17   : > { %s2194_s11 = sshll.u32 %s244_s10, 3  ;;  %v2237_v42 = vld [vmem:[%s3220_s3 + $0x58] sm:$0xff]  ;;  %v2243_v57 = vld [vmem:[%s3221_s4 + $0x28] sm:$0xff]  ;;  %v2245_v59 = vld [vmem:[%s3218_s1 + $0x60] sm:$0xff]  ;;  %s2267_s10 = sshll.u32 %s2830_s25, 7 }
  0x18   : > { %s246_s14 = scalar_lea.vmem %s3217_s0, %s2194_s11  ;;  %s242_s11 = scalar_lea.vmem [#allocation3], %s2193_s28 }
  0x19   : > { %v2894_v14 = vld [vmem:[%s246_s14] sm:$0xff]  ;;  %s2130_s12 = sshll.u32 %s242_s11, 4  ;;  %s3175_s15 = scalar_lea.hbm %s3223_s6, %s2267_s10  ;;  %s3177_s12 = int_to_ptr.vmem [resolvable:$true] %s2130_s12 }
  0x1a   : > { %2378 = vmatmul.mubr.msk.f32.vlgmr.msra.gmra.mrb[0].mxu1 %vm260_vm1, %v2894_v14  ;;  %2367 = vmatmul.mubr.msk.f32.vlgmr.msra.gmra.mrb[0].mxu0 %vm260_vm1, %v2894_v14  ;;  %s2706_s25 = scalar_lea.vmem %s3177_s12, 128  ;;  %p2713_p0 = scmp.lt.s32.totalorder %s3177_s12, %s2711_s18 }
  0x1b   : > { %2393 = vmatprep.mubr.msk.f32.mxu1 %vm2771_vm0, %v2772_v11  ;;  %2388 = vmatprep.mubr.msk.f32.mxu0 %vm2771_vm0, %v2772_v11  ;;  %p2707_p11 = scmp.ne.s32.totalorder %s3177_s12, %s2706_s25  ;;  %p2714_p1 = scmp.lt.s32.totalorder %s2712_s19, %s2706_s25 }
  0x1c   : > { %2572 = vmatpush3.bf16.msra.mxu0 %v2571_v18  ;;  %v2598_v18 = vpack.c.bf16 %v2222_v17, %v2221_v16 }
  0x1d   : > { %2573 = vmatprep.subr.bf16.mxu0 %v2770_v3  ;;  %p2708_p12 = pnand %p2707_p11, %p2847_p5  ;;  %p2715_p2 = por %p2714_p1, %p2713_p0 }
  0x1f   : > { %p2709_p13 = pneg %p2708_p12 }
  0x20   : > { %2575 = vmatpush3.bf16.msra.mxu0 %v2574_v20  ;;  %v2225_v20 = vld [vmem:[%s3218_s1 + $0x48] sm:$0xff] }
  0x21   : > { %2585 = vmatprep.subr.bf16.mxu0 %v2770_v3  ;;  %p2716_p3 = pnand %p2715_p2, %p2709_p13 }
  0x23   : > { %2389 = vmatmul.mubr.msk.f32.vlgmr.msra.gmra.mrb[2].mxu0 %vm260_vm1, %v2894_v14 }
  0x24   : > { %2427 = vmatprep.mubr.msk.f32.mxu0 %vm2771_vm0, %v2772_v11  ;;  %2587 = vmatpush3.bf16.msra.mxu0 %v2586_v40  ;;  %v2236_v40 = vld [vmem:[%s3220_s3 + $0x50] sm:$0xff] }
  0x25   : > { %2588 = vmatprep.subr.bf16.mxu0 %v2770_v3 }
  0x28   : > { %2590 = vmatpush3.bf16.msra.mxu0 %v2589_v43  ;;  %v2616_v43 = vpack.c.bf16 %v2237_v42, %v2236_v40 }
  0x29   : > { %2441 = vmatprep.subr.mxu0 %v2772_v11 }
  0x2b   : > { %2428 = vmatmul.mubr.msk.f32.vlgmr.msra.gmra.mrb[4].mxu0 %vm260_vm1, %v2894_v14 }
  0x2c   : > { %2443 = vmatprep.mubr.msk.f32.mxu0 %vm2771_vm0, %v2772_v11 }
  0xed   : > { %v404_v21 = vpop.f32.mrb[0].mxu1  ;;  %v330_v23 = vpop.f32.mrb[0].mxu0 }
  0xee   : > { %v2379_v22 = vpop.f32.mrb[1].mxu1  ;;  %2392 = vmatpush3.xpose.msk.msra.mxu1 %vm482_vm2, %v404_v21  ;;  %v2368_v24 = vpop.f32.mrb[1].mxu0  ;;  %v2601_v21 = vpack.c.bf16 %v2225_v20, %v2224_v19  ;;  %v2256_v19 = vld [vmem:[%s3220_s3 + $0x68] sm:$0xff]  ;;  %v2257_v20 = vld [vmem:[%s3220_s3 + $0x70] sm:$0xff] }
  0xef   : > { %2396 = vmatprep.subr.mxu1 %v2772_v11  ;;  %v2226_v22 = vld [vmem:[%s3218_s1 + $0x50] sm:$0xff] }
  0xf1   : > { %2394 = vmatmul.mubr.msk.f32.vlgmr.msra.gmra.mrb[2].mxu1 %vm482_vm2, %v330_v23  ;;  %v2227_v23 = vld [vmem:[%s3218_s1 + $0x58] sm:$0xff] }
  0xf2   : > { %2398 = vmatprep.mubr.msk.f32.mxu1 %vm2771_vm0, %v2772_v11  ;;  %v2604_v24 = vpack.c.bf16 %v2227_v23, %v2226_v22  ;;  %v2258_v22 = vld [vmem:[%s3220_s3 + $0x78] sm:$0xff] }
  0xf3   : > { %v2637_v23 = vpack.c.bf16 %v2258_v22, %v2257_v20 }
  0xf6   : > { %v478_v28 = vpop.f32.mrb[2].mxu0 }
  0xf7   : > { %v2390_v29 = vpop.f32.mrb[3].mxu0  ;;  %2397 = vmatpush3.msra.mxu1 %v478_v28 }
  0xf8   : > { %2576 = vmatprep.subr.bf16.mxu1 %v2770_v3 }
  0xfe   : > { %v868_v55 = vpop.f32.mrb[4].mxu0 }
  0xff   : > { %v2429_v56 = vpop.f32.mrb[5].mxu0  ;;  %2442 = vmatpush3.xpose.msk.msra.mxu0 %vm482_vm2, %v868_v55 }
 0x100   : > { %2446 = vmatprep.subr.mxu0 %v2772_v11  ;;  %v2242_v56 = vld [vmem:[%s3221_s4 + $0x20] sm:$0xff] }
 0x101   : > { %v2619_v58 = vpack.c.bf16 %v2243_v57, %v2242_v56 }
 0x1c4   : > { %v555_v25 = vpop.f32.mrb[2].mxu1 }
 0x1c5   : > { %v2395_v26 = vpop.f32.mrb[3].mxu1  ;;  %v560_v27 = vsel %vm559_vm3, %v555_v25, -inf }
 0x1c6   : > { %561 = vmax.xlane.f32.xlu0 %v560_v27  ;;  %v2229_v26 = vld [vmem:[%s3219_s2 + $0x40] sm:$0xff]  ;;  %v2230_v27 = vld [vmem:[%s3219_s2 + $0x48] sm:$0xff] }
 0x253   : > { %v562_v30 = vpop.xlane.xlu0 %561 }
 0x254   : > { %v563_v31 = vsub.f32 %v555_v25, %v562_v30  ;;  %v2607_v30 = vpack.c.bf16 %v2230_v27, %v2229_v26 }
 0x256   : > { %v564_v32 = vmul.f32 1.442695, %v563_v31 }
 0x258   : > { %2690 = vpow2.f32 %v564_v32 }
 0x262   : > { %v2691_v33 = vpop.eup %2690 }
 0x263   : > { %2399 = vmatmul.mubr.msk.f32.vlgmr.msra.gmra.mrb[4].mxu1 %vm559_vm3, %v2691_v33  ;;  %v566_v34 = vsel %vm559_vm3, %v2691_v33, 0.0  ;;  %v2231_v33 = vld [vmem:[%s3219_s2 + $0x50] sm:$0xff] }
 0x264   : > { %567 = vadd.xlane.f32.xlu0 %v566_v34  ;;  %2405 = vmatprep.mubr.msk.f32.mxu1 %vm2771_vm0, %v2772_v11  ;;  %v2232_v34 = vld [vmem:[%s3219_s2 + $0x58] sm:$0xff] }
 0x265   : > { %2578 = vmatpush3.bf16.msra.mxu1 %v2577_v38  ;;  %v2610_v35 = vpack.c.bf16 %v2232_v34, %v2231_v33  ;;  %v2234_v38 = vld [vmem:[%s3220_s3 + $0x40] sm:$0xff] }
 0x266   : > { %2579 = vmatprep.subr.bf16.mxu1 %v2770_v3  ;;  %v2613_v41 = vpack.c.bf16 %v2235_v39, %v2234_v38 }
 0x2f1   : > { %v568_v44 = vpop.xlane.xlu0 %567 }
 0x2f2   : > { %2692 = vrcp.f32 %v568_v44 }
 0x2fc   : > { %v2693_v47 = vpop.eup %2692 }
 0x336   : > { %v638_v48 = vpop.f32.mrb[4].mxu1 }
 0x337   : > { %v643_v50 = vmul.f32 %v2693_v47, %v638_v48  ;;  %v2400_v51 = vpop.f32.mrb[5].mxu1 }
 0x339   : > { %2406 = vmatmul.mubr.msk.f32.vlgmr.msra.gmra.mrb[6].mxu1 %vm482_vm2, %v643_v50 }
 0x33a   : > { %2581 = vmatpush3.bf16.msra.mxu1 %v2580_v49  ;;  %2416 = vmatprep.mubr.msk.f32.mxu1 %vm2771_vm0, %v2772_v11 }
 0x33b   : > { %2582 = vmatprep.subr.bf16.mxu1 %v2770_v3 }
 0x33e   : > { %2584 = vmatpush3.bf16.msra.mxu1 %v2583_v54 }
 0x33f   : > { %2591 = vmatprep.subr.bf16.mxu1 %v2770_v3 }
 0x341   : > { %2417 = vmatmul.mubr.msk.f32.vlgmr.msra.gmra.mrb[8].mxu1 %vm260_vm1, %v2894_v14 }
 0x342   : > { %2438 = vmatprep.mubr.msk.f32.mxu1 %vm2771_vm0, %v2772_v11  ;;  %2593 = vmatpush3.bf16.msra.mxu1 %v2592_v60  ;;  %v2246_v60 = vld [vmem:[%s3218_s1 + $0x68] sm:$0xff] }
 0x343   : > { %2594 = vmatprep.subr.bf16.mxu1 %v2770_v3  ;;  %v2622_v61 = vpack.c.bf16 %v2246_v60, %v2245_v59 }
 0x346   : > { %2596 = vmatpush3.bf16.msra.mxu1 %v2595_v62  ;;  %v2247_v62 = vld [vmem:[%s3218_s1 + $0x70] sm:$0xff] }
 0x347   : > { %2600 = vmatprep.subr.bf16.mxu1 %v2770_v3 }
 0x349   : > { %2439 = vmatmul.mubr.msk.f32.vlgmr.msra.gmra.mrb[10].mxu1 %vm260_vm1, %v2894_v14 }
 0x34a   : > { %2466 = vmatprep.mubr.msk.f32.mxu1 %vm2771_vm0, %v2772_v11  ;;  %2602 = vmatpush3.bf16.msra.mxu1 %v2601_v21 }
 0x34b   : > { %2603 = vmatprep.subr.bf16.mxu1 %v2770_v3 }
 0x34e   : > { %2605 = vmatpush3.bf16.msra.mxu1 %v2604_v24 }
 0x34f   : > { %2612 = vmatprep.subr.bf16.mxu1 %v2770_v3 }
 0x351   : > { %2467 = vmatmul.mubr.msk.f32.vlgmr.msra.gmra.mrb[12].mxu1 %vm260_vm1, %v2894_v14 }
 0x352   : > { %2488 = vmatprep.mubr.msk.f32.mxu1 %vm2771_vm0, %v2772_v11  ;;  %2614 = vmatpush3.bf16.msra.mxu1 %v2613_v41 }
 0x353   : > { %2615 = vmatprep.subr.bf16.mxu1 %v2770_v3 }
 0x356   : > { %2617 = vmatpush3.bf16.msra.mxu1 %v2616_v43 }
 0x357   : > { %2496 = vmatprep.subr.mxu1 %v2772_v11 }
 0x359   : > { %2489 = vmatmul.mubr.msk.f32.vlgmr.msra.gmra.mrb[14].mxu1 %vm260_vm1, %v2894_v14 }
 0x35a   : > { %2498 = vmatprep.mubr.msk.f32.mxu1 %vm2771_vm0, %v2772_v11 }
 0x40c   : > { %v3001_v63 = vpop.f32.mrb[6].mxu1 }
 0x40d   : > { %v2407_v0 = vpop.f32.mrb[7].mxu1 }
 0x40e   : > { %v2248_v0 = vld [vmem:[%s3218_s1 + $0x78] sm:$0xff] }
 0x414   : > { %v793_v1 = vpop.f32.mrb[8].mxu1 }
 0x415   : > { %v2418_v2 = vpop.f32.mrb[9].mxu1  ;;  %2444 = vmatmul.mubr.msk.f32.vlgmr.msra.gmra.mrb[6].mxu0 %vm482_vm2, %v793_v1  ;;  %v2625_v1 = vpack.c.bf16 %v2248_v0, %v2247_v62 }
 0x416   : > { %2448 = vmatprep.mubr.msk.f32.mxu0 %vm2771_vm0, %v2772_v11 }
 0x41c   : > { %v943_v7 = vpop.f32.mrb[10].mxu1 }
 0x41d   : > { %v2440_v8 = vpop.f32.mrb[11].mxu1  ;;  %2447 = vmatpush3.msra.mxu0 %v943_v7 }
 0x41e   : > { %2597 = vmatprep.subr.bf16.mxu0 %v2770_v3 }
 0x424   : > { %v1257_v36 = vpop.f32.mrb[12].mxu1 }
 0x425   : > { %v2468_v37 = vpop.f32.mrb[13].mxu1 }
 0x42c   : > { %v1407_v49 = vpop.f32.mrb[14].mxu1 }
 0x42d   : > { %v2490_v50 = vpop.f32.mrb[15].mxu1  ;;  %2497 = vmatpush3.msra.mxu1 %v1407_v49 }
 0x42e   : > { %2621 = vmatprep.subr.bf16.mxu1 %v2770_v3 }
 0x4e8   : > { %v1019_v4 = vpop.f32.mrb[6].mxu0 }
 0x4e9   : > { %v2445_v5 = vpop.f32.mrb[7].mxu0  ;;  %v1023_v6 = vsel %vm559_vm3, %v1019_v4, -inf }
 0x4ea   : > { %1024 = vmax.xlane.f32.xlu1 %v1023_v6  ;;  %v2251_v5 = vld [vmem:[%s3219_s2 + $0x68] sm:$0xff] }
 0x577   : > { %v1025_v9 = vpop.xlane.xlu1 %1024 }
 0x578   : > { %v1026_v10 = vsub.f32 %v1019_v4, %v1025_v9  ;;  %v2250_v4 = vld [vmem:[%s3219_s2 + $0x60] sm:$0xff] }
 0x579   : > { %v2628_v8 = vpack.c.bf16 %v2251_v5, %v2250_v4 }
 0x57a   : > { %v1027_v12 = vmul.f32 1.442695, %v1026_v10 }
 0x57c   : > { %2694 = vpow2.f32 %v1027_v12  ;;  %v2252_v12 = vld [vmem:[%s3219_s2 + $0x70] sm:$0xff] }
 0x586   : > { %v2695_v13 = vpop.eup %2694 }
 0x587   : > { %2449 = vmatmul.mubr.msk.f32.vlgmr.msra.gmra.mrb[8].mxu0 %vm559_vm3, %v2695_v13  ;;  %v1029_v15 = vsel %vm559_vm3, %v2695_v13, 0.0  ;;  %v2253_v13 = vld [vmem:[%s3219_s2 + $0x78] sm:$0xff] }
 0x588   : > { %1030 = vadd.xlane.f32.xlu1 %v1029_v15  ;;  %2455 = vmatprep.mubr.msk.f32.mxu0 %vm2771_vm0, %v2772_v11  ;;  %v2631_v15 = vpack.c.bf16 %v2253_v13, %v2252_v12 }
 0x589   : > { %2599 = vmatpush3.bf16.msra.mxu0 %v2598_v18  ;;  %v2255_v18 = vld [vmem:[%s3220_s3 + $0x60] sm:$0xff] }
 0x58a   : > { %2606 = vmatprep.subr.bf16.mxu0 %v2770_v3  ;;  %v2634_v21 = vpack.c.bf16 %v2256_v19, %v2255_v18 }
 0x615   : > { %v1031_v25 = vpop.xlane.xlu1 %1030 }
 0x616   : > { %2696 = vrcp.f32 %v1031_v25 }
 0x620   : > { %v2697_v28 = vpop.eup %2696 }
 0x65a   : > { %v1101_v29 = vpop.f32.mrb[8].mxu0 }
 0x65b   : > { %v1106_v31 = vmul.f32 %v2697_v28, %v1101_v29  ;;  %v2450_v32 = vpop.f32.mrb[9].mxu0 }
 0x65d   : > { %2456 = vmatmul.mubr.msk.f32.vlgmr.msra.gmra.mrb[10].mxu0 %vm482_vm2, %v1106_v31 }
 0x65e   : > { %2608 = vmatpush3.bf16.msra.mxu0 %v2607_v30  ;;  %2477 = vmatprep.mubr.msk.f32.mxu0 %vm2771_vm0, %v2772_v11 }
 0x65f   : > { %2609 = vmatprep.subr.bf16.mxu0 %v2770_v3 }
 0x662   : > { %2611 = vmatpush3.bf16.msra.mxu0 %v2610_v35  ;;  %v2263_v35 = vld [vmem:[%s3221_s4 + $0x30] sm:$0xff] }
 0x663   : > { %2491 = vmatprep.subr.mxu0 %v2772_v11 }
 0x665   : > { %2478 = vmatmul.mubr.msk.f32.vlgmr.msra.gmra.mrb[12].mxu0 %vm260_vm1, %v2894_v14 }
 0x666   : > { %2493 = vmatprep.mubr.msk.f32.mxu0 %vm2771_vm0, %v2772_v11 }
 0x738   : > { %v1332_v44 = vpop.f32.mrb[12].mxu0 }
 0x739   : > { %v2479_v45 = vpop.f32.mrb[13].mxu0  ;;  %2492 = vmatpush3.xpose.msk.msra.mxu0 %vm482_vm2, %v1332_v44 }
 0x73a   : > { %2618 = vmatprep.subr.bf16.mxu0 %v2770_v3 }
 0x73c   : > { %2494 = vmatmul.mubr.msk.f32.vlgmr.msra.gmra.mrb[14].mxu0 %vm482_vm2, %v1257_v36 }
 0x73d   : > { %2505 = vmatprep.mubr.msk.f32.mxu0 %vm2771_vm0, %v2772_v11  ;;  %2620 = vmatpush3.bf16.msra.mxu0 %v2619_v58 }
 0x73e   : > { %2627 = vmatprep.subr.bf16.mxu0 %v2770_v3 }
 0x80f   : > { %v1483_v46 = vpop.f32.mrb[14].mxu0 }
 0x810   : > { %v2495_v47 = vpop.f32.mrb[15].mxu0  ;;  %v1487_v48 = vsel %vm559_vm3, %v1483_v46, -inf }
 0x811   : > { %1488 = vmax.xlane.f32.xlu0 %v1487_v48 }
 0x89e   : > { %v1489_v51 = vpop.xlane.xlu0 %1488 }
 0x89f   : > { %v1490_v52 = vsub.f32 %v1483_v46, %v1489_v51 }
 0x8a1   : > { %v1491_v53 = vmul.f32 1.442695, %v1490_v52 }
 0x8a3   : > { %2698 = vpow2.f32 %v1491_v53 }
 0x8ad   : > { %v2699_v54 = vpop.eup %2698 }
 0x8ae   : > { %2499 = vmatmul.mubr.msk.f32.vlgmr.msra.gmra.mrb[16].mxu1 %vm559_vm3, %v2699_v54  ;;  %v1493_v55 = vsel %vm559_vm3, %v2699_v54, 0.0 }
 0x8af   : > { %1494 = vadd.xlane.f32.xlu1 %v1493_v55  ;;  %2516 = vmatprep.mubr.msk.f32.mxu1 %vm2771_vm0, %v2772_v11 }
 0x8b0   : > { %2623 = vmatpush3.bf16.msra.mxu1 %v2622_v61 }
 0x8b1   : > { %2624 = vmatprep.subr.bf16.mxu1 %v2770_v3 }
 0x8b4   : > { %2626 = vmatpush3.bf16.msra.mxu1 %v2625_v1 }
 0x8b5   : > { %2633 = vmatprep.subr.bf16.mxu1 %v2770_v3 }
 0x8b7   : > { %2517 = vmatmul.mubr.msk.f32.vlgmr.msra.gmra.mrb[18].mxu1 %vm260_vm1, %v2894_v14 }
 0x8b8   : > { %2538 = vmatprep.mubr.msk.f32.mxu1 %vm2771_vm0, %v2772_v11  ;;  %2635 = vmatpush3.bf16.msra.mxu1 %v2634_v21 }
 0x8b9   : > { %2636 = vmatprep.subr.bf16.mxu1 %v2770_v3 }
 0x8bc   : > { %2638 = vmatpush3.bf16.msra.mxu1 %v2637_v23 }
 0x8bf   : > { %2539 = vmatmul.mubr.msk.f32.vlgmr.msra.gmra.mrb[20].mxu1 %vm260_vm1, %v2894_v14 }
 0x93c   : > { %v1495_v2 = vpop.xlane.xlu1 %1494 }
 0x93d   : > { %2700 = vrcp.f32 %v1495_v2 }
 0x947   : > { %v2701_v6 = vpop.eup %2700 }
 0x981   : > { %v1565_v7 = vpop.f32.mrb[16].mxu1 }
 0x982   : > { %v1570_v9 = vmul.f32 %v2701_v6, %v1565_v7  ;;  %v2500_v10 = vpop.f32.mrb[17].mxu1 }
 0x984   : > { %2506 = vmatmul.mubr.msk.f32.vlgmr.msra.gmra.mrb[10].mxu0 %vm482_vm2, %v1570_v9 }
 0x985   : > { %2629 = vmatpush3.bf16.msra.mxu0 %v2628_v8  ;;  %2527 = vmatprep.mubr.msk.f32.mxu0 %vm2771_vm0, %v2772_v11 }
 0x986   : > { %2630 = vmatprep.subr.bf16.mxu0 %v2770_v3 }
 0x989   : > { %2632 = vmatpush3.bf16.msra.mxu0 %v2631_v15 }
 0x98a   : > { %2541 = vmatprep.subr.mxu0 %v2772_v11  ;;  %v1721_v16 = vpop.f32.mrb[18].mxu1 }
 0x98b   : > { %v2518_v17 = vpop.f32.mrb[19].mxu1 }
 0x98c   : > { %2528 = vmatmul.mubr.msk.f32.vlgmr.msra.gmra.mrb[16].mxu0 %vm260_vm1, %v2894_v14 }
 0x98d   : > { %2543 = vmatprep.mubr.msk.f32.mxu0 %vm2771_vm0, %v2772_v11 }
 0x992   : > { %v1871_v29 = vpop.f32.mrb[20].mxu1 }
 0x993   : > { %v2540_v30 = vpop.f32.mrb[21].mxu1 }
 0xa5f   : > { %v1796_v24 = vpop.f32.mrb[16].mxu0 }
 0xa60   : > { %v2529_v25 = vpop.f32.mrb[17].mxu0  ;;  %2542 = vmatpush3.xpose.msk.msra.mxu0 %vm482_vm2, %v1796_v24 }
 0xa61   : > { %2546 = vmatprep.subr.mxu0 %v2772_v11 }
 0xa63   : > { %2544 = vmatmul.mubr.msk.f32.vlgmr.msra.gmra.mrb[18].mxu0 %vm482_vm2, %v1721_v16 }
 0xa64   : > { %2548 = vmatprep.mubr.msk.f32.mxu0 %vm2771_vm0, %v2772_v11  ;;  %2547 = vmatpush3.msra.mxu0 %v1871_v29 }
 0xa65   : > { %2639 = vmatprep.subr.bf16.mxu0 %v2770_v3  ;;  %v2264_v3 = vld [vmem:[%s3221_s4 + $0x38] sm:$0xff] }
 0xa66   : > { %v2640_v36 = vpack.c.bf16 %v2264_v3, %v2263_v35 }
 0xb36   : > { %v1947_v26 = vpop.f32.mrb[18].mxu0 }
 0xb37   : > { %v2545_v27 = vpop.f32.mrb[19].mxu0  ;;  %v1951_v28 = vsel %vm559_vm3, %v1947_v26, -inf }
 0xb38   : > { %1952 = vmax.xlane.f32.xlu0 %v1951_v28 }
 0xbc5   : > { %v1953_v14 = vpop.xlane.xlu0 %1952 }
 0xbc6   : > { %v1954_v31 = vsub.f32 %v1947_v26, %v1953_v14 }
 0xbc8   : > { %v1955_v32 = vmul.f32 1.442695, %v1954_v31 }
 0xbca   : > { %2702 = vpow2.f32 %v1955_v32 }
 0xbd4   : > { %v2703_v33 = vpop.eup %2702 }
 0xbd5   : > { %2549 = vmatmul.mubr.msk.f32.vlgmr.msra.gmra.mrb[20].mxu0 %vm559_vm3, %v2703_v33  ;;  %v1957_v34 = vsel %vm559_vm3, %v2703_v33, 0.0 }
 0xbd6   : > { %1958 = vadd.xlane.f32.xlu1 %v1957_v34  ;;  %2555 = vmatprep.mubr.msk.f32.mxu0 %vm2771_vm0, %v2772_v11  ;;  %v2195_v11 = vld [vmem:[%s3222_s5] ss:$0 sm:$0xff] }
 0xbd7   : > { %2641 = vmatpush3.bf16.msra.mxu0 %v2640_v36  ;;  %v720_v42 = vadd.f32 %v2195_v11, %v3001_v63 }
 0xc63   : > { %v1959_v37 = vpop.xlane.xlu1 %1958 }
 0xc64   : > { %2704 = vrcp.f32 %v1959_v37 }
 0xc6e   : > { %v2705_v38 = vpop.eup %2704 }
 0xca8   : > { %v2029_v39 = vpop.f32.mrb[20].mxu0 }
 0xca9   : > { %v2034_v40 = vmul.f32 %v2705_v38, %v2029_v39  ;;  %v2550_v41 = vpop.f32.mrb[21].mxu0 }
 0xcab   : > { %2556 = vmatmul.mubr.msk.f32.vlgmr.msra.gmra.mrb[10].mxu0 %vm482_vm2, %v2034_v40 }
 0xd7e   : > { %v2108_v43 = vpop.f32.mrb[10].mxu0 }
 0xd7f   : > { %v2643_v44 = vadd.f32 %v2108_v43, %v720_v42  ;;  %v2557_v45 = vpop.f32.mrb[11].mxu0 }
 0xd81   : > { %2115 = vst [vmem:[%s242_s11] sm:$0xff] %v2643_v44 }
 0xd82   : > { %2719 = shalt.err (!%p2716_p3)
}
 0xd83   : > { %s2720_s20 = scalar_lea.hbm %s3175_s15, 128  ;;  %s2724_s29 = scalar_lea.hbm %s3223_s6, 256 }
 0xd84   : > { %p2721_p4 = scmp.ne.s32.totalorder %s3175_s15, %s2720_s20  ;;  %p2725_p9 = scmp.lt.u32.totalorder %s3175_s15, %s3223_s6 }
 0xd85   : > { %p2726_p10 = scmp.lt.u32.totalorder %s2724_s29, %s2720_s20  ;;  %p2728_p12 = scmp.lt.u32.totalorder %s2720_s20, %s3175_s15 }
 0xd86   : > { %p2722_p7 = pnand %p2721_p4, %p2847_p5 }
 0xd87   : > { %p2727_p11 = por %p2726_p10, %p2725_p9 }
 0xd88   : > { %p2723_p8 = pneg %p2722_p7 }
 0xd89   : > { %p2729_p13 = por %p2728_p12, %p2727_p11 }
 0xd8b   : > { %p2730_p0 = pnand %p2729_p13, %p2723_p8 }
 0xd8d   : > { %2733 = shalt.err (!%p2730_p0)
}
 0xd8e   : > { %2648 = dma.vmem_to_hbm [thread:$0]  (%p2847_p5), %s3177_s12, 128, %s3175_s15, %s2117_s16  }
 0xd8f PF: > { %p2654_p1 = scmp.ge.s32.totalorder %s2768_s24, 2  ;;  %s2142_s11 = sand.u32 1, %s2756_s21  }
 0xd90   : > { %s2143_s13 = scalar_lea.sflag [#allocation4], %s2142_s11 }
 0xd91   : > { %p2651_p2 = pnand %p2654_p1, %p2851_p6 }
 0xd93   : > { %2751 = dma.done.wait (!%p2651_p2), %s2143_s13, 128  }
 0xd94   : > { %2753 = vsyncadd (!%p2651_p2), %s2143_s13, 4294967168  ;;  %p16_p3 = scmp.ge.s32.totalorder %s2834_s27, 4   ;;  %s3226_s21 = smov %s2760_s22 }
 0xd95   : > { %s3227_s22 = smov %s2764_s23  ;;  %s3228_s23 = smov %s2845_s30 }
 0xd96   : > { %s3229_s24 = smov %s2834_s27  ;;  %18 = sbr.rel (!%p16_p3) target bundleno = 3 (0x3), region = 91 }
 0xd9d   :  { %2148 = vsyncpa [#allocation4], 1 }
 0xd9e   :  { %2150 = vsyncpa [#allocation4 + $0x1], 1 }

</bundles_post_ra>
